<compile_context>
chip_gen: v6e
topology: v6e:2x2x1
jax: 0.10.0
libtpu: 0.0.40
codegen_flags: <defaults>
</compile_context>

<pallas_src>
import math
import functools
import numpy as np

import jax
import jax.numpy as jnp
from jax.experimental import pallas as pl
from jax.experimental.pallas import tpu as pltpu


# ----------------------------------------------------------------------------
# Schedule setup (pure glue, done once in float64 with numpy, mirroring the
# torch buffers which are computed in float64 and registered as float32).
# ----------------------------------------------------------------------------
def sigmoid_beta_schedule(timesteps, start=-3, end=3, tau=1, clamp_min=1e-5):
    steps = timesteps + 1
    t = np.linspace(0, timesteps, steps, dtype=np.float64) / timesteps
    sigmoid = lambda z: 1.0 / (1.0 + np.exp(-z))
    v_start = sigmoid(start / tau)
    v_end = sigmoid(end / tau)
    alphas_cumprod = (-sigmoid((t * (end - start) + start) / tau) + v_end) / (v_end - v_start)
    alphas_cumprod = alphas_cumprod / alphas_cumprod[0]
    betas = 1.0 - alphas_cumprod[1:] / alphas_cumprod[:-1]
    return np.clip(betas, 0.0, 0.999)


def _round_up(x, m):
    return ((x + m - 1) // m) * m


def _choose_block(b_pad, target):
    """Largest multiple-of-8 divisor of b_pad that is <= target."""
    best, d = 8, 8
    while d <= min(b_pad, target):
        if b_pad % d == 0:
            best = d
        d += 8
    return best


# ----------------------------------------------------------------------------
# Pallas kernel: per block of TB images:
#   normalize -> q_sample -> stand-in model (VPU channel mix) -> pred_v target
#   -> weighted squared error, partially reduced to a lane-dense (1, HW) row.
# ----------------------------------------------------------------------------
def _p_losses_kernel(w_ref, b_ref, sa_ref, so_ref, lw_ref, img_ref, noise_ref,
                     out_ref, *, C, HW):
    # (TB, C*HW) fully (8,128)-dense slabs
    x = img_ref[...].astype(jnp.float32)       # upcast in-kernel (native dtype DMA)
    nz = noise_ref[...]                        # (TB, C*HW) f32

    sa = sa_ref[...]                           # (TB, 1) sqrt_alphas_cumprod[t]
    so = so_ref[...]                           # (TB, 1) sqrt_one_minus_alphas_cumprod[t]
    lw = lw_ref[...]                           # (TB, 1) loss_weight[t] / (C*HW*B)

    x0 = x * 2.0 - 1.0                         # normalize_to_neg_one_to_one
    x_t = sa * x0 + so * nz                    # q_sample
    v = sa * nz - so * x0                      # objective == 'pred_v' target

    # stand-in model: 1x1 conv over channels, unrolled on the VPU.
    # channel c lives in the lane range [c*HW, (c+1)*HW) -> lane-aligned slices.
    sq = jnp.zeros((x.shape[0], HW), jnp.float32)
    for o in range(C):
        mo = b_ref[o] + w_ref[o, 0] * x_t[:, 0:HW]
        for c in range(1, C):
            mo = mo + w_ref[o, c] * x_t[:, c * HW:(c + 1) * HW]
        d = mo - v[:, o * HW:(o + 1) * HW]
        sq = sq + d * d

    # per-image weight (already includes 1/(C*HW) and 1/B), then partially
    # reduce over the image (sublane) axis -> lane-dense (1, HW) partial.
    out_ref[...] = jnp.sum(sq * lw, axis=0, keepdims=True)


class GaussianDiffusionPallas:
    """Pallas re-implementation of GaussianDiffusion.forward (pred_v, sigmoid schedule)."""

    def __init__(self, *, channels, image_size, timesteps=1000, seed=42,
                 block_images=512):
        self.channels = channels
        self.image_size = (image_size, image_size)
        self.num_timesteps = timesteps
        self.block_images = block_images  # target images per grid step

        betas = sigmoid_beta_schedule(timesteps)
        alphas = 1.0 - betas
        alphas_cumprod = np.cumprod(alphas)

        self.sqrt_alphas_cumprod = jnp.asarray(np.sqrt(alphas_cumprod), jnp.float32)
        self.sqrt_one_minus_alphas_cumprod = jnp.asarray(
            np.sqrt(1.0 - alphas_cumprod), jnp.float32)
        snr = alphas_cumprod / (1.0 - alphas_cumprod)
        # objective == 'pred_v' (default): loss_weight = snr / (snr + 1)
        self.loss_weight = jnp.asarray(snr / (snr + 1.0), jnp.float32)

        # deterministic stand-in model parameters (1x1 conv: channels -> channels)
        kw, kb = jax.random.split(jax.random.PRNGKey(seed))
        self.w = jax.random.normal(kw, (channels, channels), jnp.float32) / math.sqrt(channels)
        self.bias = jax.random.normal(kb, (channels,), jnp.float32) * 0.01

    # ---- forward pass (like GaussianDiffusion.forward -> p_losses) ----------
    def forward(self, img, key):
        B, C, H, W = img.shape
        assert (H, W) == self.image_size and C == self.channels
        HW = H * W
        D = C * HW

        k_t, k_n = jax.random.split(key)
        t = jax.random.randint(k_t, (B,), 0, self.num_timesteps)   # random timesteps
        noise = jax.random.normal(k_n, img.shape, jnp.float32)     # randn_like

        # extract(...) gathers + fold the mean normalizations into the weight (glue)
        sa = self.sqrt_alphas_cumprod[t]
        so = self.sqrt_one_minus_alphas_cumprod[t]
        lw = self.loss_weight[t] * (1.0 / (D * B))

        # flatten to (B, C*H*W): pure reshape of contiguous NCHW, no data movement
        img_2d = img.reshape(B, D)                    # keep native dtype, upcast in-kernel
        noise_2d = noise.reshape(B, D)

        # batch blocking: pad B to a multiple of 8, pick TB | B_pad, TB <= target
        B_pad = _round_up(B, 8)
        TB = _choose_block(B_pad, self.block_images)
        G = B_pad // TB
        if B_pad != B:
            pad = B_pad - B
            img_2d = jnp.pad(img_2d, ((0, pad), (0, 0)))
            noise_2d = jnp.pad(noise_2d, ((0, pad), (0, 0)))
            sa = jnp.pad(sa, (0, pad))
            so = jnp.pad(so, (0, pad))
            lw = jnp.pad(lw, (0, pad))     # zero weight => padded rows contribute 0

        sa_col = sa.reshape(B_pad, 1)
        so_col = so.reshape(B_pad, 1)
        lw_col = lw.reshape(B_pad, 1)

        kernel = functools.partial(_p_losses_kernel, C=C, HW=HW)
        partials = pl.pallas_call(
            kernel,
            out_shape=jax.ShapeDtypeStruct((G, HW), jnp.float32),
            grid=(G,),
            in_specs=[
                pl.BlockSpec(memory_space=pltpu.MemorySpace.SMEM),   # w    (C, C) scalars
                pl.BlockSpec(memory_space=pltpu.MemorySpace.SMEM),   # bias (C,)   scalars
                pl.BlockSpec((TB, 1), lambda g: (g, 0)),             # sqrt_alphas_cumprod[t]
                pl.BlockSpec((TB, 1), lambda g: (g, 0)),             # sqrt_one_minus_alphas_cumprod[t]
                pl.BlockSpec((TB, 1), lambda g: (g, 0)),             # scaled loss_weight[t]
                pl.BlockSpec((TB, D), lambda g: (g, 0)),             # img block
                pl.BlockSpec((TB, D), lambda g: (g, 0)),             # noise block
            ],
            out_specs=pl.BlockSpec((1, HW), lambda g: (g, 0)),       # per-block partial row
            compiler_params=pltpu.CompilerParams(
                dimension_semantics=("parallel",),
                vmem_limit_bytes=32 * 1024 * 1024),
        )(self.w, self.bias, sa_col, so_col, lw_col, img_2d, noise_2d)

        # tiny final reduction outside the kernel (per-block partials are disjoint)
        return jnp.sum(partials)

    # ---- pure-JAX reference for verification --------------------------------
    def reference(self, img, key):
        B, C, H, W = img.shape
        k_t, k_n = jax.random.split(key)
        t = jax.random.randint(k_t, (B,), 0, self.num_timesteps)
        noise = jax.random.normal(k_n, img.shape, jnp.float32)

        sa = self.sqrt_alphas_cumprod[t].reshape(B, 1, 1, 1)
        so = self.sqrt_one_minus_alphas_cumprod[t].reshape(B, 1, 1, 1)
        lw = self.loss_weight[t]

        x0 = img.astype(jnp.float32) * 2.0 - 1.0
        x_t = sa * x0 + so * noise
        model_out = jnp.einsum('oc,bchw->bohw', self.w, x_t) + self.bias.reshape(1, C, 1, 1)
        v = sa * noise - so * x0
        loss = jnp.mean((model_out - v) ** 2, axis=(1, 2, 3)) * lw
        return jnp.mean(loss)


if __name__ == "__main__":
    B, C, H, W = 2, 4, 16, 16
    key = jax.random.PRNGKey(0)
    k_img, k_fwd = jax.random.split(key)

    # synthetic "images" in [0, 1], NCHW like PyTorch
    img = jax.random.uniform(k_img, (B, C, H, W), jnp.float32)

    diffusion = GaussianDiffusionPallas(channels=C, image_size=H, timesteps=1000)

    loss = diffusion.forward(img, k_fwd)
    loss = jax.block_until_ready(loss)

    ref = jax.block_until_ready(diffusion.reference(img, k_fwd))
    assert np.allclose(np.asarray(loss), np.asarray(ref), rtol=1e-4, atol=1e-5), (loss, ref)

    print("KERNEL_OK")
</pallas_src>

<mosaic_0001>
module attributes {stable_mosaic.version = 11 : i64} {
  func.func @_p_losses_kernel(%arg0: i32, %arg1: memref<4x4xf32, #tpu.memory_space<smem>>, %arg2: memref<4xf32, #tpu.memory_space<smem>>, %arg3: memref<8x1xf32, #tpu.memory_space<vmem>>, %arg4: memref<8x1xf32, #tpu.memory_space<vmem>>, %arg5: memref<8x1xf32, #tpu.memory_space<vmem>>, %arg6: memref<8x1024xf32, #tpu.memory_space<vmem>>, %arg7: memref<8x1024xf32, #tpu.memory_space<vmem>>, %arg8: memref<1x256xf32, #tpu.memory_space<vmem>>) attributes {dimension_semantics = [#tpu.dimension_semantics<parallel>], iteration_bounds = array<i64: 1>, scalar_prefetch = 0 : i64, scratch_operands = 0 : i64, tpu.core_type = #tpu.core_type<tc>, window_params = [{transform_indices = @transform_0, window_bounds = array<i64: 4, 4>}, {transform_indices = @transform_1, window_bounds = array<i64: 4>}, {transform_indices = @transform_2, window_bounds = array<i64: 8, 1>}, {transform_indices = @transform_3, window_bounds = array<i64: 8, 1>}, {transform_indices = @transform_4, window_bounds = array<i64: 8, 1>}, {transform_indices = @transform_5, window_bounds = array<i64: 8, 1024>}, {transform_indices = @transform_6, window_bounds = array<i64: 8, 1024>}, {transform_indices = @transform_7, window_bounds = array<i64: 1, 256>}]} {
    %c0 = arith.constant 0 : index
    %c0_0 = arith.constant 0 : index
    %0 = vector.load %arg6[%c0, %c0_0] : memref<8x1024xf32, #tpu.memory_space<vmem>>, vector<8x1024xf32>
    %c0_1 = arith.constant 0 : index
    %c0_2 = arith.constant 0 : index
    %1 = vector.load %arg7[%c0_1, %c0_2] : memref<8x1024xf32, #tpu.memory_space<vmem>>, vector<8x1024xf32>
    %c0_3 = arith.constant 0 : index
    %c0_4 = arith.constant 0 : index
    %2 = vector.load %arg3[%c0_3, %c0_4] : memref<8x1xf32, #tpu.memory_space<vmem>>, vector<8x1xf32>
    %c0_5 = arith.constant 0 : index
    %c0_6 = arith.constant 0 : index
    %3 = vector.load %arg4[%c0_5, %c0_6] : memref<8x1xf32, #tpu.memory_space<vmem>>, vector<8x1xf32>
    %c0_7 = arith.constant 0 : index
    %c0_8 = arith.constant 0 : index
    %4 = vector.load %arg5[%c0_7, %c0_8] : memref<8x1xf32, #tpu.memory_space<vmem>>, vector<8x1xf32>
    %cst = arith.constant 2.000000e+00 : f32
    %5 = vector.broadcast %cst : f32 to vector<8x1024xf32>
    %6 = arith.mulf %0, %5 : vector<8x1024xf32>
    %cst_9 = arith.constant 1.000000e+00 : f32
    %7 = vector.broadcast %cst_9 : f32 to vector<8x1024xf32>
    %8 = arith.subf %6, %7 : vector<8x1024xf32>
    %9 = vector.broadcast %2 : vector<8x1xf32> to vector<8x1024xf32>
    %10 = arith.mulf %9, %8 : vector<8x1024xf32>
    %11 = vector.broadcast %3 : vector<8x1xf32> to vector<8x1024xf32>
    %12 = arith.mulf %11, %1 : vector<8x1024xf32>
    %13 = arith.addf %10, %12 : vector<8x1024xf32>
    %14 = vector.broadcast %2 : vector<8x1xf32> to vector<8x1024xf32>
    %15 = arith.mulf %14, %1 : vector<8x1024xf32>
    %16 = vector.broadcast %3 : vector<8x1xf32> to vector<8x1024xf32>
    %17 = arith.mulf %16, %8 : vector<8x1024xf32>
    %18 = arith.subf %15, %17 : vector<8x1024xf32>
    %cst_10 = arith.constant 0.000000e+00 : f32
    %19 = vector.broadcast %cst_10 : f32 to vector<8x256xf32>
    %c0_11 = arith.constant 0 : index
    %20 = memref.load %arg2[%c0_11] : memref<4xf32, #tpu.memory_space<smem>>
    %c0_12 = arith.constant 0 : index
    %c0_13 = arith.constant 0 : index
    %21 = memref.load %arg1[%c0_12, %c0_13] : memref<4x4xf32, #tpu.memory_space<smem>>
    %22 = vector.extract_strided_slice %13 {offsets = [0, 0], sizes = [8, 256], strides = [1, 1]} : vector<8x1024xf32> to vector<8x256xf32>
    %23 = vector.broadcast %21 : f32 to vector<8x256xf32>
    %24 = arith.mulf %23, %22 : vector<8x256xf32>
    %25 = vector.broadcast %20 : f32 to vector<8x256xf32>
    %26 = arith.addf %25, %24 : vector<8x256xf32>
    %c0_14 = arith.constant 0 : index
    %c1 = arith.constant 1 : index
    %27 = memref.load %arg1[%c0_14, %c1] : memref<4x4xf32, #tpu.memory_space<smem>>
    %28 = vector.extract_strided_slice %13 {offsets = [0, 256], sizes = [8, 256], strides = [1, 1]} : vector<8x1024xf32> to vector<8x256xf32>
    %29 = vector.broadcast %27 : f32 to vector<8x256xf32>
    %30 = arith.mulf %29, %28 : vector<8x256xf32>
    %31 = arith.addf %26, %30 : vector<8x256xf32>
    %c0_15 = arith.constant 0 : index
    %c2 = arith.constant 2 : index
    %32 = memref.load %arg1[%c0_15, %c2] : memref<4x4xf32, #tpu.memory_space<smem>>
    %33 = vector.extract_strided_slice %13 {offsets = [0, 512], sizes = [8, 256], strides = [1, 1]} : vector<8x1024xf32> to vector<8x256xf32>
    %34 = vector.broadcast %32 : f32 to vector<8x256xf32>
    %35 = arith.mulf %34, %33 : vector<8x256xf32>
    %36 = arith.addf %31, %35 : vector<8x256xf32>
    %c0_16 = arith.constant 0 : index
    %c3 = arith.constant 3 : index
    %37 = memref.load %arg1[%c0_16, %c3] : memref<4x4xf32, #tpu.memory_space<smem>>
    %38 = vector.extract_strided_slice %13 {offsets = [0, 768], sizes = [8, 256], strides = [1, 1]} : vector<8x1024xf32> to vector<8x256xf32>
    %39 = vector.broadcast %37 : f32 to vector<8x256xf32>
    %40 = arith.mulf %39, %38 : vector<8x256xf32>
    %41 = arith.addf %36, %40 : vector<8x256xf32>
    %42 = vector.extract_strided_slice %18 {offsets = [0, 0], sizes = [8, 256], strides = [1, 1]} : vector<8x1024xf32> to vector<8x256xf32>
    %43 = arith.subf %41, %42 : vector<8x256xf32>
    %44 = arith.mulf %43, %43 : vector<8x256xf32>
    %45 = arith.addf %19, %44 : vector<8x256xf32>
    %c1_17 = arith.constant 1 : index
    %46 = memref.load %arg2[%c1_17] : memref<4xf32, #tpu.memory_space<smem>>
    %c1_18 = arith.constant 1 : index
    %c0_19 = arith.constant 0 : index
    %47 = memref.load %arg1[%c1_18, %c0_19] : memref<4x4xf32, #tpu.memory_space<smem>>
    %48 = vector.extract_strided_slice %13 {offsets = [0, 0], sizes = [8, 256], strides = [1, 1]} : vector<8x1024xf32> to vector<8x256xf32>
    %49 = vector.broadcast %47 : f32 to vector<8x256xf32>
    %50 = arith.mulf %49, %48 : vector<8x256xf32>
    %51 = vector.broadcast %46 : f32 to vector<8x256xf32>
    %52 = arith.addf %51, %50 : vector<8x256xf32>
    %c1_20 = arith.constant 1 : index
    %c1_21 = arith.constant 1 : index
    %53 = memref.load %arg1[%c1_20, %c1_21] : memref<4x4xf32, #tpu.memory_space<smem>>
    %54 = vector.extract_strided_slice %13 {offsets = [0, 256], sizes = [8, 256], strides = [1, 1]} : vector<8x1024xf32> to vector<8x256xf32>
    %55 = vector.broadcast %53 : f32 to vector<8x256xf32>
    %56 = arith.mulf %55, %54 : vector<8x256xf32>
    %57 = arith.addf %52, %56 : vector<8x256xf32>
    %c1_22 = arith.constant 1 : index
    %c2_23 = arith.constant 2 : index
    %58 = memref.load %arg1[%c1_22, %c2_23] : memref<4x4xf32, #tpu.memory_space<smem>>
    %59 = vector.extract_strided_slice %13 {offsets = [0, 512], sizes = [8, 256], strides = [1, 1]} : vector<8x1024xf32> to vector<8x256xf32>
    %60 = vector.broadcast %58 : f32 to vector<8x256xf32>
    %61 = arith.mulf %60, %59 : vector<8x256xf32>
    %62 = arith.addf %57, %61 : vector<8x256xf32>
    %c1_24 = arith.constant 1 : index
    %c3_25 = arith.constant 3 : index
    %63 = memref.load %arg1[%c1_24, %c3_25] : memref<4x4xf32, #tpu.memory_space<smem>>
    %64 = vector.extract_strided_slice %13 {offsets = [0, 768], sizes = [8, 256], strides = [1, 1]} : vector<8x1024xf32> to vector<8x256xf32>
    %65 = vector.broadcast %63 : f32 to vector<8x256xf32>
    %66 = arith.mulf %65, %64 : vector<8x256xf32>
    %67 = arith.addf %62, %66 : vector<8x256xf32>
    %68 = vector.extract_strided_slice %18 {offsets = [0, 256], sizes = [8, 256], strides = [1, 1]} : vector<8x1024xf32> to vector<8x256xf32>
    %69 = arith.subf %67, %68 : vector<8x256xf32>
    %70 = arith.mulf %69, %69 : vector<8x256xf32>
    %71 = arith.addf %45, %70 : vector<8x256xf32>
    %c2_26 = arith.constant 2 : index
    %72 = memref.load %arg2[%c2_26] : memref<4xf32, #tpu.memory_space<smem>>
    %c2_27 = arith.constant 2 : index
    %c0_28 = arith.constant 0 : index
    %73 = memref.load %arg1[%c2_27, %c0_28] : memref<4x4xf32, #tpu.memory_space<smem>>
    %74 = vector.extract_strided_slice %13 {offsets = [0, 0], sizes = [8, 256], strides = [1, 1]} : vector<8x1024xf32> to vector<8x256xf32>
    %75 = vector.broadcast %73 : f32 to vector<8x256xf32>
    %76 = arith.mulf %75, %74 : vector<8x256xf32>
    %77 = vector.broadcast %72 : f32 to vector<8x256xf32>
    %78 = arith.addf %77, %76 : vector<8x256xf32>
    %c2_29 = arith.constant 2 : index
    %c1_30 = arith.constant 1 : index
    %79 = memref.load %arg1[%c2_29, %c1_30] : memref<4x4xf32, #tpu.memory_space<smem>>
    %80 = vector.extract_strided_slice %13 {offsets = [0, 256], sizes = [8, 256], strides = [1, 1]} : vector<8x1024xf32> to vector<8x256xf32>
    %81 = vector.broadcast %79 : f32 to vector<8x256xf32>
    %82 = arith.mulf %81, %80 : vector<8x256xf32>
    %83 = arith.addf %78, %82 : vector<8x256xf32>
    %c2_31 = arith.constant 2 : index
    %c2_32 = arith.constant 2 : index
    %84 = memref.load %arg1[%c2_31, %c2_32] : memref<4x4xf32, #tpu.memory_space<smem>>
    %85 = vector.extract_strided_slice %13 {offsets = [0, 512], sizes = [8, 256], strides = [1, 1]} : vector<8x1024xf32> to vector<8x256xf32>
    %86 = vector.broadcast %84 : f32 to vector<8x256xf32>
    %87 = arith.mulf %86, %85 : vector<8x256xf32>
    %88 = arith.addf %83, %87 : vector<8x256xf32>
    %c2_33 = arith.constant 2 : index
    %c3_34 = arith.constant 3 : index
    %89 = memref.load %arg1[%c2_33, %c3_34] : memref<4x4xf32, #tpu.memory_space<smem>>
    %90 = vector.extract_strided_slice %13 {offsets = [0, 768], sizes = [8, 256], strides = [1, 1]} : vector<8x1024xf32> to vector<8x256xf32>
    %91 = vector.broadcast %89 : f32 to vector<8x256xf32>
    %92 = arith.mulf %91, %90 : vector<8x256xf32>
    %93 = arith.addf %88, %92 : vector<8x256xf32>
    %94 = vector.extract_strided_slice %18 {offsets = [0, 512], sizes = [8, 256], strides = [1, 1]} : vector<8x1024xf32> to vector<8x256xf32>
    %95 = arith.subf %93, %94 : vector<8x256xf32>
    %96 = arith.mulf %95, %95 : vector<8x256xf32>
    %97 = arith.addf %71, %96 : vector<8x256xf32>
    %c3_35 = arith.constant 3 : index
    %98 = memref.load %arg2[%c3_35] : memref<4xf32, #tpu.memory_space<smem>>
    %c3_36 = arith.constant 3 : index
    %c0_37 = arith.constant 0 : index
    %99 = memref.load %arg1[%c3_36, %c0_37] : memref<4x4xf32, #tpu.memory_space<smem>>
    %100 = vector.extract_strided_slice %13 {offsets = [0, 0], sizes = [8, 256], strides = [1, 1]} : vector<8x1024xf32> to vector<8x256xf32>
    %101 = vector.broadcast %99 : f32 to vector<8x256xf32>
    %102 = arith.mulf %101, %100 : vector<8x256xf32>
    %103 = vector.broadcast %98 : f32 to vector<8x256xf32>
    %104 = arith.addf %103, %102 : vector<8x256xf32>
    %c3_38 = arith.constant 3 : index
    %c1_39 = arith.constant 1 : index
    %105 = memref.load %arg1[%c3_38, %c1_39] : memref<4x4xf32, #tpu.memory_space<smem>>
    %106 = vector.extract_strided_slice %13 {offsets = [0, 256], sizes = [8, 256], strides = [1, 1]} : vector<8x1024xf32> to vector<8x256xf32>
    %107 = vector.broadcast %105 : f32 to vector<8x256xf32>
    %108 = arith.mulf %107, %106 : vector<8x256xf32>
    %109 = arith.addf %104, %108 : vector<8x256xf32>
    %c3_40 = arith.constant 3 : index
    %c2_41 = arith.constant 2 : index
    %110 = memref.load %arg1[%c3_40, %c2_41] : memref<4x4xf32, #tpu.memory_space<smem>>
    %111 = vector.extract_strided_slice %13 {offsets = [0, 512], sizes = [8, 256], strides = [1, 1]} : vector<8x1024xf32> to vector<8x256xf32>
    %112 = vector.broadcast %110 : f32 to vector<8x256xf32>
    %113 = arith.mulf %112, %111 : vector<8x256xf32>
    %114 = arith.addf %109, %113 : vector<8x256xf32>
    %c3_42 = arith.constant 3 : index
    %c3_43 = arith.constant 3 : index
    %115 = memref.load %arg1[%c3_42, %c3_43] : memref<4x4xf32, #tpu.memory_space<smem>>
    %116 = vector.extract_strided_slice %13 {offsets = [0, 768], sizes = [8, 256], strides = [1, 1]} : vector<8x1024xf32> to vector<8x256xf32>
    %117 = vector.broadcast %115 : f32 to vector<8x256xf32>
    %118 = arith.mulf %117, %116 : vector<8x256xf32>
    %119 = arith.addf %114, %118 : vector<8x256xf32>
    %120 = vector.extract_strided_slice %18 {offsets = [0, 768], sizes = [8, 256], strides = [1, 1]} : vector<8x1024xf32> to vector<8x256xf32>
    %121 = arith.subf %119, %120 : vector<8x256xf32>
    %122 = arith.mulf %121, %121 : vector<8x256xf32>
    %123 = arith.addf %97, %122 : vector<8x256xf32>
    %124 = vector.broadcast %4 : vector<8x1xf32> to vector<8x256xf32>
    %125 = arith.mulf %123, %124 : vector<8x256xf32>
    %cst_44 = arith.constant dense<0.000000e+00> : vector<256xf32>
    %126 = vector.multi_reduction <add>, %125, %cst_44 [0] : vector<8x256xf32> to vector<256xf32>
    %127 = vector.shape_cast %126 : vector<256xf32> to vector<1x256xf32>
    %c0_45 = arith.constant 0 : index
    %c0_46 = arith.constant 0 : index
    %128 = vector.load %arg8[%c0_45, %c0_46] : memref<1x256xf32, #tpu.memory_space<vmem>>, vector<1x256xf32>
    tpu.vector_store %arg8[%c0_45, %c0_46], %127 {strides = array<i32>} : memref<1x256xf32, #tpu.memory_space<vmem>>, vector<1x256xf32>,
    return
  }
  func.func @transform_0(%arg0: i32) -> (i32, i32) {
    %c0_i32 = arith.constant 0 : i32
    %c0_i32_0 = arith.constant 0 : i32
    %c0_i32_1 = arith.constant 0 : i32
    return %c0_i32, %c0_i32_0 : i32, i32
  }
  func.func @transform_1(%arg0: i32) -> i32 {
    %c0_i32 = arith.constant 0 : i32
    %c0_i32_0 = arith.constant 0 : i32
    return %c0_i32 : i32
  }
  func.func @transform_2(%arg0: i32) -> (i32, i32) {
    %c0_i32 = arith.constant 0 : i32
    %c0_i32_0 = arith.constant 0 : i32
    return %arg0, %c0_i32 : i32, i32
  }
  func.func @transform_3(%arg0: i32) -> (i32, i32) {
    %c0_i32 = arith.constant 0 : i32
    %c0_i32_0 = arith.constant 0 : i32
    return %arg0, %c0_i32 : i32, i32
  }
  func.func @transform_4(%arg0: i32) -> (i32, i32) {
    %c0_i32 = arith.constant 0 : i32
    %c0_i32_0 = arith.constant 0 : i32
    return %arg0, %c0_i32 : i32, i32
  }
  func.func @transform_5(%arg0: i32) -> (i32, i32) {
    %c0_i32 = arith.constant 0 : i32
    %c0_i32_0 = arith.constant 0 : i32
    return %arg0, %c0_i32 : i32, i32
  }
  func.func @transform_6(%arg0: i32) -> (i32, i32) {
    %c0_i32 = arith.constant 0 : i32
    %c0_i32_0 = arith.constant 0 : i32
    return %arg0, %c0_i32 : i32, i32
  }
  func.func @transform_7(%arg0: i32) -> (i32, i32) {
    %c0_i32 = arith.constant 0 : i32
    %c0_i32_0 = arith.constant 0 : i32
    return %arg0, %c0_i32 : i32, i32
  }
}

</mosaic_0001>

<bundles_post_ra>
// kernel: tpu_custom_call.1
= control target key start
LH: loop header
LB: loop body
LE: loop exit
PB: predicated region body
PF: predicated region fallthrough
CT: control target
= control target key end

     0   :  { %12 = vsyncpa [#allocation5], 0  ;;  %s835_s0 = inlined_call_operand.vmem [shape: f32[4,4], index: 0, kind: input, shape index: {}]   ;;  %s836_s1 = inlined_call_operand.vmem [shape: f32[4], index: 1, kind: input, shape index: {}]   ;;  %s837_s2 = inlined_call_operand.vmem [shape: f32[8,1], index: 2, kind: input, shape index: {}]   ;;  %s838_s3 = inlined_call_operand.vmem [shape: f32[8,1], index: 3, kind: input, shape index: {}]   ;;  %s839_s4 = inlined_call_operand.vmem [shape: f32[8,1], index: 4, kind: input, shape index: {}]   ;;  %s840_s5 = inlined_call_operand.hbm [shape: f32[8,1024], index: 5, kind: input, shape index: {}]   ;;  %s841_s6 = inlined_call_operand.hbm [shape: f32[8,1024], index: 6, kind: input, shape index: {}]   ;;  %s842_s7 = inlined_call_operand.hbm [shape: f32[1,256], index: 7, kind: output, shape index: {}]  }
   0x1   :  { %13 = vsyncpa [#allocation7], 0 }
   0x2   :  { %14 = vsyncpa [#allocation3], 0 }
   0x3   :  { %15 = vsyncpa [#allocation10], 0 }
   0x4   :  { %16 = vsyncpa [#allocation4], 0  ;;  %s23_s26 = sshll.u32 %s835_s0, 4  ;;  %s33_s29 = sshll.u32 %s836_s1, 4  ;;  %s24_s26 = int_to_ptr.vmem [resolvable:$true] %s23_s26  ;;  %s34_s29 = int_to_ptr.vmem [resolvable:$true] %s33_s29 }
   0x5   :  { %s392_s30 = scalar_lea.vmem %s24_s26, 64  ;;  %p397_p1 = scmp.lt.s32.totalorder %s24_s26, %s24_s26 }
   0x6   :  { %p393_p0 = scmp.ne.s32.totalorder %s24_s26, %s392_s30  ;;  %p398_p2 = scmp.lt.s32.totalorder %s392_s30, %s392_s30 }
   0x8   :  { %p399_p3 = por %p398_p2, %p397_p1 }
   0xa   :  { %p400_p4 = pnand %p399_p3, %p393_p0 }
   0xc   :  { %403 = shalt.err (!%p400_p4)
}
   0xd   :  { %s486_s8 = smov [#allocation2]   ;;  %s404_s9 = scalar_lea.vmem %s34_s29, 16 }
   0xe   :  { %26 = dma.vmem_to_smem %s24_s26, 64, %s486_s8, [#allocation5]  }
   0xf   :  { %p405_p5 = scmp.ne.s32.totalorder %s34_s29, %s404_s9  ;;  %p409_p6 = scmp.lt.s32.totalorder %s34_s29, %s34_s29 }
  0x10   :  { %p410_p7 = scmp.lt.s32.totalorder %s404_s9, %s404_s9 }
  0x12   :  { %p411_p8 = por %p410_p7, %p409_p6 }
  0x14   :  { %p412_p9 = pnand %p411_p8, %p405_p5 }
  0x16   :  { %415 = shalt.err (!%p412_p9)
}
  0x17   :  { %s487_s0 = smov [#allocation6]   ;;  %s488_s1 = smov [#allocation8]  }
  0x18   :  { %36 = dma.vmem_to_smem %s34_s29, 16, %s487_s0, [#allocation7]  }
  0x19   :  { %s49_s10 = sshll.u32 %s488_s1, 4  ;;  %s489_s11 = smov [#allocation9]   ;;  %s50_s10 = int_to_ptr.vmem [resolvable:$true] %s49_s10 }
  0x1a   :  { %s59_s12 = sshll.u32 %s489_s11, 4  ;;  %s424_s13 = scalar_lea.vmem %s50_s10, 1024  ;;  %s60_s12 = int_to_ptr.vmem [resolvable:$true] %s59_s12 }
  0x1b   :  { %p425_p10 = scmp.ne.s32.totalorder %s50_s10, %s424_s13  ;;  %p429_p11 = scmp.lt.s32.totalorder %s50_s10, %s50_s10 }
  0x1c   :  { %p430_p12 = scmp.lt.s32.totalorder %s424_s13, %s424_s13 }
  0x1e   :  { %p431_p13 = por %p430_p12, %p429_p11 }
  0x20   :  { %p432_p0 = pnand %p431_p13, %p425_p10 }
  0x22   :  { %435 = shalt.err (!%p432_p0)
}
  0x23   :  { %52 = dma.hbm_to_vmem [thread:$0]  %s840_s5, 1024, %s50_s10, [#allocation3]  }
  0x24   :  { %s444_s16 = scalar_lea.vmem %s60_s12, 1024  ;;  %p449_p2 = scmp.lt.s32.totalorder %s60_s12, %s60_s12 }
  0x25   :  { %p445_p1 = scmp.ne.s32.totalorder %s60_s12, %s444_s16  ;;  %p450_p3 = scmp.lt.s32.totalorder %s444_s16, %s444_s16 }
  0x27   :  { %p451_p4 = por %p450_p3, %p449_p2 }
  0x29   :  { %p452_p5 = pnand %p451_p4, %p445_p1 }
  0x2b   :  { %455 = shalt.err (!%p452_p5)
}
  0x2c   :  { %62 = dma.hbm_to_vmem [thread:$0]  %s841_s6, 1024, %s60_s12, [#allocation10]  }
  0x2d   :  { %476 = dma.done.wait [#allocation5], 64  }
  0x2e   :  { %477 = vsyncadd [#allocation5], 4294967232 }
  0x2f   :  { %478 = dma.done.wait [#allocation7], 16  }
  0x30   :  { %479 = vsyncadd [#allocation7], 4294967280 }
  0x31   :  { %480 = dma.done.wait [#allocation3], 1024  }
  0x32   :  { %481 = vsyncadd [#allocation3], 4294966272 }
  0x33   :  { %482 = dma.done.wait [#allocation10], 1024  }
  0x34   :  { %483 = vsyncadd [#allocation10], 4294966272 }
  0x35   :  { %75 = sfence }
  0x36   :  { %v92_v0 = vld [vmem:[%s837_s2] sm:$0xff]  ;;  %v490_v2 = vmov 0   ;;  %s554_s23 = sld [smem:[#allocation2]]  ;;  %v77_v5 = vld [vmem:[#allocation8 + $0x8] sm:$0xff]  ;;  %v78_v6 = vld [vmem:[#allocation8 + $0x10] sm:$0xff]  ;;  %s492_s15 = smov [#allocation11]  }
  0x37   :  { %v94_v1 = vld [vmem:[%s839_s4] sm:$0xff]  ;;  %390 = vset.pattern.permute.xlu0 %v490_v2  ;;  %391 = vset.pattern.permute.xlu1 %v490_v2  ;;  %s556_s24 = sld [smem:[#allocation6]]  ;;  %v79_v7 = vld [vmem:[#allocation8 + $0x18] sm:$0xff]  ;;  %v81_v9 = vld [vmem:[#allocation8 + $0x28] sm:$0xff]  ;;  %v96_v13 = vmul.f32 2.0, %v77_v5  ;;  %v97_v14 = vmul.f32 2.0, %v78_v6 }
  0x38   :  { %113 = vperm.xlu0 %390, %v92_v0   ;;  %299 = vperm.xlu1 %391, %v94_v1   ;;  %v93_v3 = vld [vmem:[%s838_s3] sm:$0xff]  ;;  %s558_s25 = sld [smem:[#allocation2 + $0x1]]  ;;  %v82_v10 = vld [vmem:[#allocation8 + $0x30] sm:$0xff]  ;;  %v83_v11 = vld [vmem:[#allocation8 + $0x38] sm:$0xff]  ;;  %v98_v15 = vmul.f32 2.0, %v79_v7  ;;  %v100_v17 = vmul.f32 2.0, %v81_v9 }
  0x39   :  { %s560_s2 = sld [smem:[#allocation2 + $0x2]]  ;;  %v76_v4 = vld [vmem:[#allocation8] sm:$0xff]  ;;  %v101_v18 = vmul.f32 2.0, %v82_v10  ;;  %v102_v19 = vmul.f32 2.0, %v83_v11  ;;  %v358_v23 = vadd.f32 -1.0, %v96_v13  ;;  %v359_v25 = vadd.f32 -1.0, %v97_v14 }
  0x3a   :  { %s562_s26 = sld [smem:[#allocation2 + $0x3]]  ;;  %v80_v8 = vld [vmem:[#allocation8 + $0x20] sm:$0xff]  ;;  %v95_v12 = vmul.f32 2.0, %v76_v4  ;;  %v360_v26 = vadd.f32 -1.0, %v98_v15  ;;  %v600_v29 = vadd.f32 -1.0, %v100_v17  ;;  %v85_v50 = vld [vmem:[#allocation9 + $0x8] sm:$0xff] }
  0x3b   :  { %s564_s4 = sld [smem:[#allocation6 + $0x1]]  ;;  %v99_v16 = vmul.f32 2.0, %v80_v8  ;;  %v602_v30 = vadd.f32 -1.0, %v101_v18  ;;  %v604_v31 = vadd.f32 -1.0, %v102_v19  ;;  %v84_v49 = vld [vmem:[#allocation9] sm:$0xff]  ;;  %v86_v56 = vld [vmem:[#allocation9 + $0x10] sm:$0xff] }
  0x3c   :  { %126 = vperm.xlu0 %390, %v93_v3   ;;  %s566_s27 = sld [smem:[#allocation2 + $0x80]]  ;;  %v171_v20 = vstv %s554_s23  ;;  %v357_v22 = vadd.f32 -1.0, %v95_v12  ;;  %v87_v57 = vld [vmem:[#allocation9 + $0x18] sm:$0xff]  ;;  %v88_v58 = vld [vmem:[#allocation9 + $0x20] sm:$0xff]  ;;  %v89_v63 = vld [vmem:[#allocation9 + $0x28] sm:$0xff]  ;;  %s345_s16 = sshll.u32 %s492_s15, 4  ;;  %s346_s16 = int_to_ptr.vmem [resolvable:$true] %s345_s16 }
  0x3d   :  { %s568_s28 = sld [smem:[#allocation2 + $0x81]]  ;;  %v174_v21 = vstv %s556_s24  ;;  %v597_v27 = vadd.f32 -1.0, %v99_v16  ;;  %v638_v0 = vld [vmem:[#allocation9 + $0x30] sm:$0xff]  ;;  %v640_v1 = vld [vmem:[#allocation9 + $0x38] sm:$0xff]  ;;  %s456_s17 = scalar_lea.vmem %s346_s16, 32 }
  0x3e   :  { %s570_s29 = sld [smem:[#allocation2 + $0x82]]  ;;  %v178_v24 = vstv %s558_s25  ;;  %p457_p6 = scmp.ne.s32.totalorder %s346_s16, %s456_s17 }
  0x3f   :  { %s572_s3 = sld [smem:[#allocation2 + $0x83]]  ;;  %v184_v28 = vstv %s560_s2  ;;  %p461_p7 = scmp.lt.s32.totalorder %s346_s16, %s346_s16 }
  0x40   :  { %s574_s30 = sld [smem:[#allocation6 + $0x2]]  ;;  %v190_v32 = vstv %s562_s26  ;;  %p462_p8 = scmp.lt.s32.totalorder %s456_s17, %s456_s17 }
  0x41   :  { %s576_s8 = sld [smem:[#allocation2 + $0x100]]  ;;  %v206_v34 = vstv %s564_s4 }
  0x42   :  { %s578_s9 = sld [smem:[#allocation2 + $0x101]]  ;;  %v203_v33 = vstv %s566_s27  ;;  %p463_p9 = por %p462_p8, %p461_p7 }
  0x43   :  { %s580_s0 = sld [smem:[#allocation2 + $0x102]]  ;;  %v210_v35 = vstv %s568_s28 }
  0x44   :  { %s582_s1 = sld [smem:[#allocation2 + $0x103]]  ;;  %v216_v37 = vstv %s570_s29  ;;  %p464_p10 = pnand %p463_p9, %p457_p6 }
  0x45   :  { %s584_s10 = sld [smem:[#allocation6 + $0x3]]  ;;  %v222_v38 = vstv %s572_s3 }
  0x46   :  { %s586_s11 = sld [smem:[#allocation2 + $0x180]]  ;;  %v238_v40 = vstv %s574_s30 }
  0x47   :  { %s588_s12 = sld [smem:[#allocation2 + $0x181]]  ;;  %v235_v39 = vstv %s576_s8 }
  0x48   :  { %s590_s13 = sld [smem:[#allocation2 + $0x182]]  ;;  %v242_v41 = vstv %s578_s9 }
  0x49   :  { %s592_s14 = sld [smem:[#allocation2 + $0x183]]  ;;  %v248_v42 = vstv %s580_s0 }
  0x4a   :  { %v254_v43 = vstv %s582_s1 }
  0x4b   :  { %v270_v44 = vstv %s584_s10 }
  0x4c   :  { %v267_v45 = vstv %s586_s11 }
  0x4d   :  { %v274_v46 = vstv %s588_s12 }
  0x4e   :  { %v280_v47 = vstv %s590_s13 }
  0x4f   :  { %v286_v48 = vstv %s592_s14 }
  0xb3   :  { %v610_v36 = vpop.permute.xlu0 %113 }
  0xb4   :  { %v116_v51 = vmul.f32 %v357_v22, %v610_v36  ;;  %v117_v52 = vmul.f32 %v358_v23, %v610_v36  ;;  %v118_v53 = vmul.f32 %v359_v25, %v610_v36  ;;  %v119_v54 = vmul.f32 %v360_v26, %v610_v36 }
  0xb5   :  { %v120_v59 = vmul.f32 %v597_v27, %v610_v36  ;;  %v121_v60 = vmul.f32 %v600_v29, %v610_v36  ;;  %v122_v61 = vmul.f32 %v602_v30, %v610_v36  ;;  %v123_v62 = vmul.f32 %v604_v31, %v610_v36 }
  0xb6   :  { %v653_v10 = vmul.f32 %v610_v36, %v84_v49  ;;  %v656_v11 = vmul.f32 %v610_v36, %v85_v50  ;;  %v659_v12 = vmul.f32 %v610_v36, %v86_v56  ;;  %v662_v13 = vmul.f32 %v610_v36, %v87_v57 }
  0xb7   :  { %v628_v55 = vpop.permute.xlu0 %126 }
  0xb8   :  { %v129_v2 = vmul.f32 %v628_v55, %v84_v49  ;;  %v130_v3 = vmul.f32 %v628_v55, %v85_v50  ;;  %v131_v4 = vmul.f32 %v628_v55, %v86_v56  ;;  %v132_v5 = vmul.f32 %v628_v55, %v87_v57 }
  0xb9   :  { %v133_v6 = vmul.f32 %v628_v55, %v88_v58  ;;  %v134_v7 = vmul.f32 %v628_v55, %v89_v63  ;;  %v135_v8 = vmul.f32 %v628_v55, %v638_v0  ;;  %v136_v9 = vmul.f32 %v628_v55, %v640_v1 }
  0xba   :  { %v664_v14 = vadd.f32 %v129_v2, %v116_v51  ;;  %v666_v15 = vadd.f32 %v130_v3, %v117_v52  ;;  %v668_v16 = vadd.f32 %v131_v4, %v118_v53  ;;  %v670_v17 = vadd.f32 %v132_v5, %v119_v54 }
  0xbb   :  { %v153_v18 = vmul.f32 %v357_v22, %v628_v55  ;;  %v154_v19 = vmul.f32 %v358_v23, %v628_v55  ;;  %v675_v49 = vmul.f32 %v359_v25, %v628_v55  ;;  %v678_v50 = vmul.f32 %v360_v26, %v628_v55 }
  0xbc   :  { %v680_v51 = vadd.f32 %v133_v6, %v120_v59  ;;  %v682_v52 = vadd.f32 %v134_v7, %v121_v60  ;;  %v684_v53 = vadd.f32 %v135_v8, %v122_v61  ;;  %v686_v22 = vadd.f32 %v136_v9, %v123_v62 }
  0xbd   :  { %v689_v23 = vmul.f32 %v610_v36, %v88_v58  ;;  %v692_v25 = vmul.f32 %v610_v36, %v89_v63  ;;  %v696_v26 = vmul.f32 %v597_v27, %v628_v55  ;;  %v700_v54 = vmul.f32 %v600_v29, %v628_v55 }
  0xbe   :  { %v161_v56 = vsub.f32 %v653_v10, %v153_v18  ;;  %v162_v57 = vsub.f32 %v656_v11, %v154_v19  ;;  %v163_v58 = vsub.f32 %v659_v12, %v675_v49  ;;  %v164_v27 = vsub.f32 %v662_v13, %v678_v50 }
  0xbf   :  { %v172_v59 = vmul.f32 %v171_v20, %v664_v14  ;;  %v173_v29 = vmul.f32 %v171_v20, %v666_v15  ;;  %v179_v60 = vmul.f32 %v178_v24, %v668_v16  ;;  %v180_v61 = vmul.f32 %v178_v24, %v670_v17 }
  0xc0   :  { %v185_v62 = vmul.f32 %v184_v28, %v680_v51  ;;  %v186_v63 = vmul.f32 %v184_v28, %v682_v52  ;;  %v191_v2 = vmul.f32 %v190_v32, %v684_v53  ;;  %v192_v20 = vmul.f32 %v190_v32, %v686_v22 }
  0xc1   :  { %v175_v3 = vadd.f32 %v174_v21, %v172_v59  ;;  %v176_v24 = vadd.f32 %v174_v21, %v173_v29  ;;  %v204_v4 = vmul.f32 %v203_v33, %v664_v14  ;;  %v205_v5 = vmul.f32 %v203_v33, %v666_v15 }
  0xc2   :  { %v211_v28 = vmul.f32 %v210_v35, %v668_v16  ;;  %v212_v6 = vmul.f32 %v210_v35, %v670_v17  ;;  %v217_v32 = vmul.f32 %v216_v37, %v680_v51  ;;  %v218_v21 = vmul.f32 %v216_v37, %v682_v52 }
  0xc3   :  { %v181_v7 = vadd.f32 %v179_v60, %v175_v3  ;;  %v182_v8 = vadd.f32 %v180_v61, %v176_v24  ;;  %v207_v33 = vadd.f32 %v206_v34, %v204_v4  ;;  %v208_v9 = vadd.f32 %v206_v34, %v205_v5 }
  0xc4   :  { %v223_v10 = vmul.f32 %v222_v38, %v684_v53  ;;  %v224_v35 = vmul.f32 %v222_v38, %v686_v22  ;;  %v236_v11 = vmul.f32 %v235_v39, %v664_v14  ;;  %v237_v37 = vmul.f32 %v235_v39, %v666_v15 }
  0xc5   :  { %v187_v12 = vadd.f32 %v185_v62, %v181_v7  ;;  %v188_v13 = vadd.f32 %v186_v63, %v182_v8  ;;  %v213_v18 = vadd.f32 %v211_v28, %v207_v33  ;;  %v214_v19 = vadd.f32 %v212_v6, %v208_v9 }
  0xc6   :  { %v239_v34 = vadd.f32 %v238_v40, %v236_v11  ;;  %v240_v49 = vadd.f32 %v238_v40, %v237_v37  ;;  %v243_v50 = vmul.f32 %v242_v41, %v668_v16  ;;  %v244_v38 = vmul.f32 %v242_v41, %v670_v17 }
  0xc7   :  { %v193_v59 = vadd.f32 %v191_v2, %v187_v12  ;;  %v194_v29 = vadd.f32 %v192_v20, %v188_v13  ;;  %v219_v39 = vadd.f32 %v217_v32, %v213_v18  ;;  %v220_v60 = vadd.f32 %v218_v21, %v214_v19 }
  0xc8   :  { %v245_v61 = vadd.f32 %v243_v50, %v239_v34  ;;  %v246_v62 = vadd.f32 %v244_v38, %v240_v49  ;;  %v249_v63 = vmul.f32 %v248_v42, %v680_v51  ;;  %v250_v40 = vmul.f32 %v248_v42, %v682_v52  ;;  %v300_v38 = vpop.permute.xlu1 %299 }
  0xc9   :  { %v195_v3 = vsub.f32 %v193_v59, %v161_v56  ;;  %v196_v24 = vsub.f32 %v194_v29, %v162_v57  ;;  %v225_v4 = vadd.f32 %v223_v10, %v219_v39  ;;  %v226_v5 = vadd.f32 %v224_v35, %v220_v60 }
  0xca   :  { %v251_v41 = vadd.f32 %v249_v63, %v245_v61  ;;  %v252_v2 = vadd.f32 %v250_v40, %v246_v62  ;;  %v255_v20 = vmul.f32 %v254_v43, %v684_v53  ;;  %v256_v28 = vmul.f32 %v254_v43, %v686_v22 }
  0xcb   :  { %v165_v42 = vsub.f32 %v689_v23, %v696_v26  ;;  %v166_v56 = vsub.f32 %v692_v25, %v700_v54  ;;  %v227_v57 = vsub.f32 %v225_v4, %v163_v58  ;;  %v228_v6 = vsub.f32 %v226_v5, %v164_v27 }
  0xcc   :  { %v257_v32 = vadd.f32 %v255_v20, %v251_v41  ;;  %v258_v21 = vadd.f32 %v256_v28, %v252_v2  ;;  %v268_v7 = vmul.f32 %v267_v45, %v664_v14  ;;  %v269_v8 = vmul.f32 %v267_v45, %v666_v15 }
  0xcd   :  { %v197_v43 = vmul.f32 %v195_v3, %v195_v3  ;;  %v198_v33 = vmul.f32 %v196_v24, %v196_v24  ;;  %v229_v9 = vmul.f32 %v227_v57, %v227_v57  ;;  %v230_v10 = vmul.f32 %v228_v6, %v228_v6 }
  0xce   :  { %v271_v23 = vadd.f32 %v270_v44, %v268_v7  ;;  %v272_v25 = vadd.f32 %v270_v44, %v269_v8  ;;  %v275_v26 = vmul.f32 %v274_v46, %v668_v16  ;;  %v276_v14 = vmul.f32 %v274_v46, %v670_v17 }
  0xcf   :  { %v159_v45 = vmul.f32 %v602_v30, %v628_v55  ;;  %v160_v15 = vmul.f32 %v604_v31, %v628_v55  ;;  %v259_v54 = vsub.f32 %v257_v32, %v165_v42  ;;  %v260_v58 = vsub.f32 %v258_v21, %v166_v56 }
  0xd0   :  { %v277_v27 = vadd.f32 %v275_v26, %v271_v23  ;;  %v278_v35 = vadd.f32 %v276_v14, %v272_v25  ;;  %v281_v44 = vmul.f32 %v280_v47, %v680_v51  ;;  %v282_v16 = vmul.f32 %v280_v47, %v682_v52 }
  0xd1   :  { %v151_v46 = vmul.f32 %v610_v36, %v638_v0  ;;  %v152_v17 = vmul.f32 %v610_v36, %v640_v1  ;;  %v231_v30 = vadd.f32 %v229_v9, %v197_v43  ;;  %v232_v11 = vadd.f32 %v230_v10, %v198_v33 }
  0xd2   :  { %v283_v37 = vadd.f32 %v281_v44, %v277_v27  ;;  %v284_v31 = vadd.f32 %v282_v16, %v278_v35  ;;  %v287_v55 = vmul.f32 %v286_v48, %v684_v53  ;;  %v288_v12 = vmul.f32 %v286_v48, %v686_v22 }
  0xd3   :  { %v167_v51 = vsub.f32 %v151_v46, %v159_v45  ;;  %v168_v13 = vsub.f32 %v152_v17, %v160_v15  ;;  %v261_v18 = vmul.f32 %v259_v54, %v259_v54  ;;  %v262_v47 = vmul.f32 %v260_v58, %v260_v58 }
  0xd4   :  { %v289_v52 = vadd.f32 %v287_v55, %v283_v37  ;;  %v290_v19 = vadd.f32 %v288_v12, %v284_v31  ;;  %v491_v62 = vmov 1966171168   ;;  %v322_v40 = vlaneseq }
  0xd5   :  { %v263_v0 = vadd.f32 %v261_v18, %v231_v30  ;;  %v264_v34 = vadd.f32 %v262_v47, %v232_v11  ;;  %v320_v63 = vunpack.c.l.s4 %v491_v62 }
  0xd6   :  { %v291_v49 = vsub.f32 %v289_v52, %v167_v51  ;;  %v292_v36 = vsub.f32 %v290_v19, %v168_v13  ;;  %v323_v2 = vshrl.u32 %v322_v40, 7  ;;  %vm336_vm0 = vcmp.lt.s32.totalorder %v322_v40, 256 }
  0xd7   :  { %v321_v41 = vunpack.c.0.s8 %v320_v63 }
  0xd8   :  { %v293_v1 = vmul.f32 %v291_v49, %v291_v49  ;;  %v294_v50 = vmul.f32 %v292_v36, %v292_v36 }
  0xd9   :  { %v324_v57 = vsub.s32 %v321_v41, %v323_v2 }
  0xda   :  { %v295_v59 = vadd.f32 %v293_v1, %v263_v0  ;;  %v296_v29 = vadd.f32 %v294_v50, %v264_v34 }
  0xdc   :  { %v302_v39 = vmul.f32 %v300_v38, %v295_v59  ;;  %v303_v53 = vmul.f32 %v300_v38, %v296_v29 }
  0xde   :  { %v304_v60 = vrot.slane %v302_v39, 4  ;;  %v310_v61 = vrot.slane %v303_v53, 4 }
  0xe0   :  { %v305_v48 = vadd.f32 %v304_v60, %v302_v39  ;;  %v311_v22 = vadd.f32 %v310_v61, %v303_v53 }
  0xe2   :  { %v306_v3 = vrot.slane %v305_v48, 2  ;;  %v312_v24 = vrot.slane %v311_v22, 2 }
  0xe4   :  { %v307_v4 = vadd.f32 %v306_v3, %v305_v48  ;;  %v313_v5 = vadd.f32 %v312_v24, %v311_v22 }
  0xe6   :  { %v308_v20 = vrot.slane %v307_v4, 1  ;;  %v314_v28 = vrot.slane %v313_v5, 1 }
  0xe8   :  { %v309_v42 = vadd.f32 %v308_v20, %v307_v4  ;;  %v315_v56 = vadd.f32 %v314_v28, %v313_v5 }
  0xea   :  { %v318_v6 = vcombine.low %v309_v42, %v315_v56 }
  0xec   :  { %v325_v32 = vrot.slane %v318_v6, %v324_v57 }
  0xee   :  { %v332_v21 = vrot.slane %v325_v32, %v324_v57 }
  0xf0   :  { %338 = vst.msk [vmem:[#allocation11] sm:$0x3] %vm336_vm0, %v332_v21 }
  0xf1   :  { %467 = shalt.err (!%p464_p10)
}
  0xf2   :  { %348 = dma.vmem_to_hbm [thread:$0]  %s346_s16, 32, %s842_s7, [#allocation4]  }
  0xf3   :  { %484 = dma.done.wait [#allocation4], 32  }
  0xf4   :  { %485 = vsyncadd [#allocation4], 4294967264 }
  0xf5   :  { %352 = vsyncpa [#allocation3], 1 }
  0xf6   :  { %353 = vsyncpa [#allocation10], 1 }
  0xf7   :  { %354 = vsyncpa [#allocation4], 1 }
  0xf8   :  { %355 = vsyncpa [#allocation5], 1 }
  0xf9   :  { %356 = vsyncpa [#allocation7], 1 }

</bundles_post_ra>
